<compile_context>
chip_gen: v7x
topology: tpu7x:2x2x1
jax: 0.10.0
libtpu: 0.0.40
codegen_flags: <defaults>
</compile_context>

<pallas_src>
import functools

import jax
import jax.numpy as jnp
from jax.experimental import pallas as pl
from jax.experimental.pallas import tpu as pltpu


def _round_up(n: int, m: int) -> int:
    return ((n + m - 1) // m) * m


def _vmem_limit_bytes() -> int:
    """Chip-aware VMEM limit: ~100 MiB on v5e/v6e (128 MiB physical), ~48 MiB on v7x (64 MiB)."""
    cap = 64 << 20  # conservative default (v7x per-TensorCore VMEM)
    try:
        cap = int(getattr(pltpu.get_tpu_info(), "vmem_capacity_bytes", cap))
    except Exception:
        pass
    return max(32 << 20, min(cap - (16 << 20), 100 << 20))


def _pick_batch_tile(B, S, H1p, H2p, Ap, in_bytes, out_bytes, vmem_budget) -> int:
    """Largest batch tile whose working set fits comfortably in the VMEM budget."""
    B8 = _round_up(max(B, 1), 8)
    if B8 <= 256:
        return B8  # single grid step, no batch padding beyond the 8-row sublane tile
    resident = (2 * (S * H1p + H1p * H2p + H2p * Ap) * in_bytes   # weights (double-buffered)
                + 2 * (H1p + H2p + Ap) * 4)                       # f32 biases (double-buffered)
    for tm in (4096, 2048, 1024, 512, 256):
        if tm > B8:
            continue
        per_tile = (2 * tm * S * in_bytes        # x tile (double-buffered)
                    + 2 * tm * Ap * out_bytes    # out tile (double-buffered)
                    + tm * (H1p + H2p + Ap) * 4)  # f32 intermediates (h1, h2, acc)
        if resident + per_tile <= int(0.7 * vmem_budget):
            return tm
    return 256


def _mlp3_kernel(x_ref, w1_ref, b1_ref, w2_ref, b2_ref, w3_ref, b3_ref, out_ref, *, precision):
    # Layer 1: MXU matmul with f32 accumulation; bias-add/ReLU in f32 on the VPU
    # (safe on v5e which has no bf16 VPU).
    h1 = jnp.dot(x_ref[...], w1_ref[...], preferred_element_type=jnp.float32, precision=precision)
    h1 = jnp.maximum(h1 + b1_ref[...], 0.0)
    # Layer 2: Linear + ReLU (cast activations back to the matmul dtype for the MXU).
    h2 = jnp.dot(h1.astype(w2_ref.dtype), w2_ref[...], preferred_element_type=jnp.float32,
                 precision=precision)
    h2 = jnp.maximum(h2 + b2_ref[...], 0.0)
    # Head: Linear (no activation); store in the output (compute) dtype.
    out = jnp.dot(h2.astype(w3_ref.dtype), w3_ref[...], preferred_element_type=jnp.float32,
                  precision=precision)
    out_ref[...] = (out + b3_ref[...]).astype(out_ref.dtype)


def prepare_params(params, compute_dtype=jnp.bfloat16, lane_align=128):
    """Pad weights to lane-dense (multiple-of-128) hidden/output dims and cast to the matmul
    dtype ONCE (call at init, not per forward).  Layout stays (in_features, out_features) so
    y = x @ W + b matches PyTorch's x @ W.T.  Padding is semantics-preserving: padded weight
    rows/cols are zero, so padded hidden units are ReLU(0 + 0) = 0 and padded action columns
    are sliced off by the forward pass."""
    w1, b1, w2, b2, w3, b3 = (jnp.asarray(params[k]) for k in ("w1", "b1", "w2", "b2", "w3", "b3"))
    S, H1 = w1.shape
    H2 = w2.shape[1]
    A = w3.shape[1]
    H1p, H2p, Ap = (_round_up(d, lane_align) for d in (H1, H2, A))
    cdt = compute_dtype
    # TODO(synk): on v6e/v7x pad hidden/contraction dims to 256 (2x256x256 MXU) when the real
    # hidden size exceeds 128; 128 alignment kept here for v5e and tiny nets.
    w1p = jnp.zeros((S, H1p), cdt).at[:, :H1].set(w1.astype(cdt))     # contraction dim stays S
    w2p = jnp.zeros((H1p, H2p), cdt).at[:H1, :H2].set(w2.astype(cdt))
    w3p = jnp.zeros((H2p, Ap), cdt).at[:H2, :A].set(w3.astype(cdt))
    b1p = jnp.zeros((1, H1p), jnp.float32).at[:, :H1].set(b1.reshape(1, -1).astype(jnp.float32))
    b2p = jnp.zeros((1, H2p), jnp.float32).at[:, :H2].set(b2.reshape(1, -1).astype(jnp.float32))
    b3p = jnp.zeros((1, Ap), jnp.float32).at[:, :A].set(b3.reshape(1, -1).astype(jnp.float32))
    return {"w1": w1p, "b1": b1p, "w2": w2p, "b2": b2p, "w3": w3p, "b3": b3p}


@functools.partial(jax.jit, static_argnames=("action_dim", "compute_dtype", "tm", "out_dtype"))
def policy_net_pallas(x, prepared, *, action_dim, compute_dtype=jnp.bfloat16, tm=None,
                      out_dtype=jnp.float32):
    """x: (B, state_dim).  prepared: output of prepare_params(...) (already padded & cast)."""
    w1p, b1p, w2p, b2p, w3p, b3p = (prepared[k] for k in ("w1", "b1", "w2", "b2", "w3", "b3"))
    B, S = x.shape
    assert w1p.shape[0] == S, "state_dim mismatch between x and prepared params"
    H1p, H2p, Ap = w1p.shape[1], w2p.shape[1], w3p.shape[1]

    cdt = jnp.dtype(compute_dtype)
    store_dtype = cdt  # bf16 output halves writeback of the 128-padded result
    vmem_limit = _vmem_limit_bytes()

    if tm is None:
        tm = _pick_batch_tile(B, S, H1p, H2p, Ap, cdt.itemsize, store_dtype.itemsize, vmem_limit)
    B_p = _round_up(max(B, 1), tm)

    # Only the batch axis is (cheaply) padded; the feature axis stays at S — a block's last
    # dim may equal the full array dim, and Mosaic pads the contraction internally in VMEM.
    xp = x.astype(cdt)
    if B_p != B:
        xp = jnp.zeros((B_p, S), cdt).at[:B].set(xp)

    grid = (B_p // tm,)
    x_spec = pl.BlockSpec((tm, S), lambda i: (i, 0))
    out_spec = pl.BlockSpec((tm, Ap), lambda i: (i, 0))
    # Constant block index -> weights/biases are DMA'd once and stay VMEM-resident.
    # TODO(synk): for production hidden sizes on v7x (64 MiB VMEM) add
    # pipeline_mode=pl.Buffered(1) on these specs and/or a K-reduction grid axis.
    const = lambda shape: pl.BlockSpec(shape, lambda i: (0, 0))

    precision = jax.lax.Precision.HIGHEST if cdt == jnp.dtype(jnp.float32) else None

    flops = 2 * B_p * (S * H1p + H1p * H2p + H2p * Ap)
    bytes_accessed = (B_p * S * cdt.itemsize
                      + (S * H1p + H1p * H2p + H2p * Ap) * cdt.itemsize
                      + (H1p + H2p + Ap) * 4
                      + B_p * Ap * store_dtype.itemsize)

    out_padded = pl.pallas_call(
        functools.partial(_mlp3_kernel, precision=precision),
        out_shape=jax.ShapeDtypeStruct((B_p, Ap), store_dtype),
        grid_spec=pltpu.PrefetchScalarGridSpec(
            num_scalar_prefetch=0,
            grid=grid,
            in_specs=[
                x_spec,
                const(w1p.shape), const(b1p.shape),
                const(w2p.shape), const(b2p.shape),
                const(w3p.shape), const(b3p.shape),
            ],
            out_specs=out_spec,
        ),
        compiler_params=pltpu.CompilerParams(
            # Batch tiles are independent.
            # TODO(synk): use pltpu.CORE_PARALLEL here on v7x (2 TensorCores/chip).
            dimension_semantics=("parallel",),
            vmem_limit_bytes=vmem_limit,
        ),
        cost_estimate=pl.CostEstimate(flops=flops, transcendentals=0,
                                      bytes_accessed=bytes_accessed),
    )(xp, w1p, b1p, w2p, b2p, w3p, b3p)

    # NOTE: padded batch rows / action columns contain ReLU-of-bias garbage by design;
    # they are sliced off here and must never be consumed directly.
    return out_padded[:B, :action_dim].astype(out_dtype)


def reference_forward(x, p):
    """Pure-JAX reference (fused XLA dot chain); also the small-batch fast path."""
    hi = jax.lax.Precision.HIGHEST
    h1 = jnp.maximum(jnp.dot(x, p["w1"], precision=hi) + p["b1"], 0.0)
    h2 = jnp.maximum(jnp.dot(h1, p["w2"], precision=hi) + p["b2"], 0.0)
    return jnp.dot(h2, p["w3"], precision=hi) + p["b3"]


_reference_forward_jit = jax.jit(reference_forward)


def policy_net_forward(x, params, prepared=None, *, compute_dtype=jnp.bfloat16, tm=None,
                       out_dtype=jnp.float32, min_pallas_batch=65):
    """PolicyNet forward.  Tiny batches (< min_pallas_batch) use a single fused XLA dot chain
    (lower latency than a Pallas launch); larger batches run the fused Pallas kernel over
    pre-padded weights."""
    if x.shape[0] < min_pallas_batch:
        return _reference_forward_jit(x, params).astype(out_dtype)
    if prepared is None:
        prepared = prepare_params(params, compute_dtype)
    return policy_net_pallas(x, prepared, action_dim=params["w3"].shape[1],
                             compute_dtype=compute_dtype, tm=tm, out_dtype=out_dtype)


def init_params(key, state_dim, action_dim, hidden_dim):
    """Deterministic init mimicking PyTorch nn.Linear default (uniform +-1/sqrt(fan_in))."""
    def linear(key, fan_in, fan_out):
        kw, kb = jax.random.split(key)
        bound = 1.0 / jnp.sqrt(fan_in)
        # stored as (in, out) so the kernel does x @ W
        w = jax.random.uniform(kw, (fan_in, fan_out), jnp.float32, -bound, bound)
        b = jax.random.uniform(kb, (1, fan_out), jnp.float32, -bound, bound)
        return w, b

    k1, k2, k3 = jax.random.split(key, 3)
    w1, b1 = linear(k1, state_dim, hidden_dim)
    w2, b2 = linear(k2, hidden_dim, hidden_dim)
    w3, b3 = linear(k3, hidden_dim, action_dim)
    return {"w1": w1, "b1": b1, "w2": w2, "b2": b2, "w3": w3, "b3": b3}


if __name__ == "__main__":
    key = jax.random.PRNGKey(0)
    batch, state_dim, action_dim, hidden_dim = 8, 16, 4, 32

    kx, kb, kp = jax.random.split(key, 3)
    x = jax.random.normal(kx, (batch, state_dim), jnp.float32)
    params = init_params(kp, state_dim, action_dim, hidden_dim)
    ref = reference_forward(x, params)

    # f32 Pallas path (exact-precision check, Pallas forced despite the tiny batch).
    prepared_f32 = prepare_params(params, jnp.float32)
    out_f32 = jax.block_until_ready(
        policy_net_pallas(x, prepared_f32, action_dim=action_dim, compute_dtype=jnp.float32))
    assert out_f32.shape == (batch, action_dim)
    assert jnp.allclose(out_f32, ref, atol=1e-5, rtol=1e-5), "f32 mismatch vs reference"

    # bf16 MXU path (default fast path) at the small shape.
    prepared_bf16 = prepare_params(params, jnp.bfloat16)
    out_bf16 = jax.block_until_ready(
        policy_net_pallas(x, prepared_bf16, action_dim=action_dim, compute_dtype=jnp.bfloat16))
    assert out_bf16.shape == (batch, action_dim)
    assert jnp.allclose(out_bf16, ref, atol=5e-2, rtol=5e-2), "bf16 mismatch vs reference"

    # Larger batch through the dispatcher with an explicit 256-row tile -> multi-step grid.
    xb = jax.random.normal(kb, (512, state_dim), jnp.float32)
    refb = reference_forward(xb, params)
    outb = jax.block_until_ready(
        policy_net_forward(xb, params, prepared_bf16, compute_dtype=jnp.bfloat16, tm=256))
    assert outb.shape == (512, action_dim)
    assert jnp.allclose(outb, refb, atol=5e-2, rtol=5e-2), "bf16 mismatch vs reference (B=512)"

    # Tiny-batch dispatch falls back to the fused XLA path (no Pallas launch latency).
    out_small = jax.block_until_ready(policy_net_forward(x, params, prepared_bf16))
    assert jnp.allclose(out_small, ref, atol=1e-5, rtol=1e-5), "small-batch fallback mismatch"

    print("KERNEL_OK")
</pallas_src>

<mosaic_0001>
module attributes {stable_mosaic.version = 11 : i64} {
  func.func @_mlp3_kernel(%arg0: i32, %arg1: memref<8x16xf32, #tpu.memory_space<vmem>>, %arg2: memref<16x128xf32, #tpu.memory_space<vmem>>, %arg3: memref<1x128xf32, #tpu.memory_space<vmem>>, %arg4: memref<128x128xf32, #tpu.memory_space<vmem>>, %arg5: memref<1x128xf32, #tpu.memory_space<vmem>>, %arg6: memref<128x128xf32, #tpu.memory_space<vmem>>, %arg7: memref<1x128xf32, #tpu.memory_space<vmem>>, %arg8: memref<8x128xf32, #tpu.memory_space<vmem>>) attributes {dimension_semantics = [#tpu.dimension_semantics<parallel>], iteration_bounds = array<i64: 1>, scalar_prefetch = 0 : i64, scratch_operands = 0 : i64, tpu.core_type = #tpu.core_type<tc>, window_params = [{transform_indices = @transform_0, window_bounds = array<i64: 8, 16>}, {pipeline_mode = #tpu.pipeline_mode<synchronous>, transform_indices = @transform_1, window_bounds = array<i64: 16, 128>}, {pipeline_mode = #tpu.pipeline_mode<synchronous>, transform_indices = @transform_2, window_bounds = array<i64: 1, 128>}, {pipeline_mode = #tpu.pipeline_mode<synchronous>, transform_indices = @transform_3, window_bounds = array<i64: 128, 128>}, {pipeline_mode = #tpu.pipeline_mode<synchronous>, transform_indices = @transform_4, window_bounds = array<i64: 1, 128>}, {pipeline_mode = #tpu.pipeline_mode<synchronous>, transform_indices = @transform_5, window_bounds = array<i64: 128, 128>}, {pipeline_mode = #tpu.pipeline_mode<synchronous>, transform_indices = @transform_6, window_bounds = array<i64: 1, 128>}, {transform_indices = @transform_7, window_bounds = array<i64: 8, 128>}]} {
    %c0 = arith.constant 0 : index
    %c0_0 = arith.constant 0 : index
    %0 = vector.load %arg1[%c0, %c0_0] : memref<8x16xf32, #tpu.memory_space<vmem>>, vector<8x16xf32>
    %c0_1 = arith.constant 0 : index
    %c0_2 = arith.constant 0 : index
    %1 = vector.load %arg2[%c0_1, %c0_2] : memref<16x128xf32, #tpu.memory_space<vmem>>, vector<16x128xf32>
    %cst = arith.constant dense<0.000000e+00> : vector<8x128xf32>
    %2 = tpu.matmul %0, %1, %cst {dimension_numbers = #tpu.dot_dimension_numbers<[1], [0], [0], [1], [0, 0, 1, 1], [], []>, precision = #tpu.contract_precision<fp32>} : vector<8x16xf32>, vector<16x128xf32>, vector<8x128xf32> -> vector<8x128xf32>
    %c0_3 = arith.constant 0 : index
    %c0_4 = arith.constant 0 : index
    %3 = vector.load %arg3[%c0_3, %c0_4] : memref<1x128xf32, #tpu.memory_space<vmem>>, vector<1x128xf32>
    %4 = vector.broadcast %3 : vector<1x128xf32> to vector<8x128xf32>
    %5 = arith.addf %2, %4 : vector<8x128xf32>
    %cst_5 = arith.constant 0.000000e+00 : f32
    %6 = vector.broadcast %cst_5 : f32 to vector<8x128xf32>
    %7 = arith.maximumf %5, %6 : vector<8x128xf32>
    %c0_6 = arith.constant 0 : index
    %c0_7 = arith.constant 0 : index
    %8 = vector.load %arg4[%c0_6, %c0_7] : memref<128x128xf32, #tpu.memory_space<vmem>>, vector<128x128xf32>
    %cst_8 = arith.constant dense<0.000000e+00> : vector<8x128xf32>
    %9 = tpu.matmul %7, %8, %cst_8 {dimension_numbers = #tpu.dot_dimension_numbers<[1], [0], [0], [1], [0, 0, 1, 1], [], []>, precision = #tpu.contract_precision<fp32>} : vector<8x128xf32>, vector<128x128xf32>, vector<8x128xf32> -> vector<8x128xf32>
    %c0_9 = arith.constant 0 : index
    %c0_10 = arith.constant 0 : index
    %10 = vector.load %arg5[%c0_9, %c0_10] : memref<1x128xf32, #tpu.memory_space<vmem>>, vector<1x128xf32>
    %11 = vector.broadcast %10 : vector<1x128xf32> to vector<8x128xf32>
    %12 = arith.addf %9, %11 : vector<8x128xf32>
    %cst_11 = arith.constant 0.000000e+00 : f32
    %13 = vector.broadcast %cst_11 : f32 to vector<8x128xf32>
    %14 = arith.maximumf %12, %13 : vector<8x128xf32>
    %c0_12 = arith.constant 0 : index
    %c0_13 = arith.constant 0 : index
    %15 = vector.load %arg6[%c0_12, %c0_13] : memref<128x128xf32, #tpu.memory_space<vmem>>, vector<128x128xf32>
    %cst_14 = arith.constant dense<0.000000e+00> : vector<8x128xf32>
    %16 = tpu.matmul %14, %15, %cst_14 {dimension_numbers = #tpu.dot_dimension_numbers<[1], [0], [0], [1], [0, 0, 1, 1], [], []>, precision = #tpu.contract_precision<fp32>} : vector<8x128xf32>, vector<128x128xf32>, vector<8x128xf32> -> vector<8x128xf32>
    %c0_15 = arith.constant 0 : index
    %c0_16 = arith.constant 0 : index
    %17 = vector.load %arg7[%c0_15, %c0_16] : memref<1x128xf32, #tpu.memory_space<vmem>>, vector<1x128xf32>
    %18 = vector.broadcast %17 : vector<1x128xf32> to vector<8x128xf32>
    %19 = arith.addf %16, %18 : vector<8x128xf32>
    %c0_17 = arith.constant 0 : index
    %c0_18 = arith.constant 0 : index
    %20 = vector.load %arg8[%c0_17, %c0_18] : memref<8x128xf32, #tpu.memory_space<vmem>>, vector<8x128xf32>
    tpu.vector_store %arg8[%c0_17, %c0_18], %19 {strides = array<i32>} : memref<8x128xf32, #tpu.memory_space<vmem>>, vector<8x128xf32>,
    return
  }
  func.func @transform_0(%arg0: i32) -> (i32, i32) {
    %c0_i32 = arith.constant 0 : i32
    %c0_i32_0 = arith.constant 0 : i32
    return %arg0, %c0_i32 : i32, i32
  }
  func.func @transform_1(%arg0: i32) -> (i32, i32) {
    %c0_i32 = arith.constant 0 : i32
    %c0_i32_0 = arith.constant 0 : i32
    %c0_i32_1 = arith.constant 0 : i32
    return %c0_i32, %c0_i32_0 : i32, i32
  }
  func.func @transform_2(%arg0: i32) -> (i32, i32) {
    %c0_i32 = arith.constant 0 : i32
    %c0_i32_0 = arith.constant 0 : i32
    %c0_i32_1 = arith.constant 0 : i32
    return %c0_i32, %c0_i32_0 : i32, i32
  }
  func.func @transform_3(%arg0: i32) -> (i32, i32) {
    %c0_i32 = arith.constant 0 : i32
    %c0_i32_0 = arith.constant 0 : i32
    %c0_i32_1 = arith.constant 0 : i32
    return %c0_i32, %c0_i32_0 : i32, i32
  }
  func.func @transform_4(%arg0: i32) -> (i32, i32) {
    %c0_i32 = arith.constant 0 : i32
    %c0_i32_0 = arith.constant 0 : i32
    %c0_i32_1 = arith.constant 0 : i32
    return %c0_i32, %c0_i32_0 : i32, i32
  }
  func.func @transform_5(%arg0: i32) -> (i32, i32) {
    %c0_i32 = arith.constant 0 : i32
    %c0_i32_0 = arith.constant 0 : i32
    %c0_i32_1 = arith.constant 0 : i32
    return %c0_i32, %c0_i32_0 : i32, i32
  }
  func.func @transform_6(%arg0: i32) -> (i32, i32) {
    %c0_i32 = arith.constant 0 : i32
    %c0_i32_0 = arith.constant 0 : i32
    %c0_i32_1 = arith.constant 0 : i32
    return %c0_i32, %c0_i32_0 : i32, i32
  }
  func.func @transform_7(%arg0: i32) -> (i32, i32) {
    %c0_i32 = arith.constant 0 : i32
    %c0_i32_0 = arith.constant 0 : i32
    return %arg0, %c0_i32 : i32, i32
  }
}

</mosaic_0001>

<bundles_post_ra>
// kernel: policy_net_pallas.1
= control target key start
LH: loop header
LB: loop body
LE: loop exit
PB: predicated region body
PF: predicated region fallthrough
CT: control target
= control target key end

     0   :  { %12 = vsyncpa [#allocation3], 0  ;;  %s3693_s0 = inlined_call_operand.hbm [shape: f32[8,16], index: 0, kind: input, shape index: {}]   ;;  %s3694_s1 = inlined_call_operand.hbm [shape: f32[16,128], index: 1, kind: input, shape index: {}]   ;;  %s3695_s2 = inlined_call_operand.vmem [shape: f32[1,128], index: 2, kind: input, shape index: {}]   ;;  %s3696_s3 = inlined_call_operand.hbm [shape: f32[128,128], index: 3, kind: input, shape index: {}]   ;;  %s3697_s4 = inlined_call_operand.vmem [shape: f32[1,128], index: 4, kind: input, shape index: {}]   ;;  %s3698_s5 = inlined_call_operand.hbm [shape: f32[128,128], index: 5, kind: input, shape index: {}]   ;;  %s3699_s6 = inlined_call_operand.vmem [shape: f32[1,128], index: 6, kind: input, shape index: {}]   ;;  %s3700_s7 = inlined_call_operand.vmem [shape: f32[8,128], index: 7, kind: output, shape index: {}]  }
   0x1   :  { %13 = vsyncpa [#allocation5], 0 }
   0x2   :  { %14 = vsyncpa [#allocation8], 0  ;;  %s3018_s24 = smov [#allocation4]   ;;  %s2924_s28 = scalar_lea.hbm %s3694_s1, 256 }
   0x3   :  { %s30_s25 = sshll.u32 %s3018_s24, 4  ;;  %p2925_p0 = scmp.ne.s32.totalorder %s3694_s1, %s2924_s28  ;;  %s31_s25 = int_to_ptr.vmem [resolvable:$true] %s30_s25 }
   0x4   :  { %p2928_p1 = scmp.lt.u32.totalorder %s2924_s28, %s3694_s1 }
   0x6   :  { %p2930_p2 = pnand %p2928_p1, %p2925_p0 }
   0x8   :  { %2933 = shalt.err (!%p2930_p2)
}
   0x9   :  { %s2934_s10 = scalar_lea.vmem %s31_s25, 256  ;;  %p2939_p4 = scmp.lt.s32.totalorder %s31_s25, %s31_s25 }
   0xa   :  { %p2935_p3 = scmp.ne.s32.totalorder %s31_s25, %s2934_s10  ;;  %p2940_p5 = scmp.lt.s32.totalorder %s2934_s10, %s2934_s10 }
   0xc   :  { %p2941_p6 = por %p2940_p5, %p2939_p4 }
   0xe   :  { %p2942_p7 = pnand %p2941_p6, %p2935_p3 }
  0x10   :  { %2945 = shalt.err (!%p2942_p7)
}
  0x11   :  { %s3019_s11 = smov 128   ;;  %s3020_s12 = smov 8  }
  0x12   :  { %36 = dma.hbm_to_vmem [thread:$0]  %s3694_s1, 256, %s31_s25, [#allocation5], %s3019_s11, %s3019_s11, %s3020_s12  }
  0x13   :  { %s3021_s15 = smov [#allocation2]   ;;  %s3022_s17 = smov [#allocation6]  }
  0x14   :  { %s21_s16 = sshll.u32 %s3021_s15, 4  ;;  %s44_s18 = sshll.u32 %s3022_s17, 4  ;;  %s22_s16 = int_to_ptr.vmem [resolvable:$true] %s21_s16  ;;  %s45_s18 = int_to_ptr.vmem [resolvable:$true] %s44_s18 }
  0x15   :  { %s2946_s21 = scalar_lea.hbm %s3693_s0, 128 }
  0x16   :  { %p2947_p8 = scmp.ne.s32.totalorder %s3693_s0, %s2946_s21  ;;  %p2950_p9 = scmp.lt.u32.totalorder %s2946_s21, %s3693_s0 }
  0x18   :  { %p2952_p10 = pnand %p2950_p9, %p2947_p8 }
  0x1a   :  { %2955 = shalt.err (!%p2952_p10)
}
  0x1b   :  { %s2956_s1 = scalar_lea.vmem %s22_s16, 128  ;;  %p2961_p12 = scmp.lt.s32.totalorder %s22_s16, %s22_s16 }
  0x1c   :  { %p2957_p11 = scmp.ne.s32.totalorder %s22_s16, %s2956_s1  ;;  %p2962_p13 = scmp.lt.s32.totalorder %s2956_s1, %s2956_s1 }
  0x1e   :  { %p2963_p0 = por %p2962_p13, %p2961_p12 }
  0x20   :  { %p2964_p1 = pnand %p2963_p0, %p2957_p11 }
  0x22   :  { %2967 = shalt.err (!%p2964_p1)
}
  0x23   :  { %24 = dma.hbm_to_vmem [thread:$0]  %s3693_s0, 128, %s22_s16, [#allocation3]  }
  0x24   :  { %s2968_s30 = scalar_lea.hbm %s3696_s3, 2048 }
  0x25   :  { %p2969_p2 = scmp.ne.s32.totalorder %s3696_s3, %s2968_s30  ;;  %p2972_p3 = scmp.lt.u32.totalorder %s2968_s30, %s3696_s3 }
  0x27   :  { %p2974_p4 = pnand %p2972_p3, %p2969_p2 }
  0x29   :  { %2977 = shalt.err (!%p2974_p4)
}
  0x2a   :  { %s2978_s14 = scalar_lea.vmem %s45_s18, 2048  ;;  %p2983_p6 = scmp.lt.s32.totalorder %s45_s18, %s45_s18 }
  0x2b   :  { %p2979_p5 = scmp.ne.s32.totalorder %s45_s18, %s2978_s14  ;;  %p2984_p7 = scmp.lt.s32.totalorder %s2978_s14, %s2978_s14 }
  0x2d   :  { %p2985_p8 = por %p2984_p7, %p2983_p6 }
  0x2f   :  { %p2986_p9 = pnand %p2985_p8, %p2979_p5 }
  0x31   :  { %2989 = shalt.err (!%p2986_p9)
}
  0x32   :  { %50 = dma.hbm_to_vmem [thread:$0]  %s3696_s3, 2048, %s45_s18, [#allocation5], %s3019_s11, %s3019_s11, %s3020_s12  }
  0x33   :  { %s3023_s16 = smov [#allocation7]   ;;  %s2990_s21 = scalar_lea.hbm %s3698_s5, 2048 }
  0x34   :  { %s58_s17 = sshll.u32 %s3023_s16, 4  ;;  %p2991_p10 = scmp.ne.s32.totalorder %s3698_s5, %s2990_s21  ;;  %s59_s17 = int_to_ptr.vmem [resolvable:$true] %s58_s17 }
  0x35   :  { %p2994_p11 = scmp.lt.u32.totalorder %s2990_s21, %s3698_s5 }
  0x37   :  { %p2996_p12 = pnand %p2994_p11, %p2991_p10 }
  0x39   :  { %2999 = shalt.err (!%p2996_p12)
}
  0x3a   :  { %s3000_s1 = scalar_lea.vmem %s59_s17, 2048  ;;  %p3005_p0 = scmp.lt.s32.totalorder %s59_s17, %s59_s17 }
  0x3b   :  { %p3001_p13 = scmp.ne.s32.totalorder %s59_s17, %s3000_s1  ;;  %p3006_p1 = scmp.lt.s32.totalorder %s3000_s1, %s3000_s1 }
  0x3d   :  { %p3007_p2 = por %p3006_p1, %p3005_p0 }
  0x3f   :  { %p3008_p3 = pnand %p3007_p2, %p3001_p13 }
  0x41   :  { %3011 = shalt.err (!%p3008_p3)
}
  0x42   :  { %64 = dma.hbm_to_vmem [thread:$0]  %s3698_s5, 2048, %s59_s17, [#allocation8], %s3019_s11, %s3019_s11, %s3020_s12  }
  0x43   :  { %3012 = dma.done.wait [#allocation3], 128  }
  0x44   :  { %3013 = vsyncadd [#allocation3], 4294967168 }
  0x45   :  { %3014 = dma.done.wait [#allocation5], 2304  }
  0x46   :  { %3015 = vsyncadd [#allocation5], 4294964992 }
  0x47   :  { %3016 = dma.done.wait [#allocation8], 2048  }
  0x48   :  { %3017 = vsyncadd [#allocation8], 4294965248  ;;  %v3024_v0 = vmov 0.0|0.0   ;;  %vm3025_vm0 = vmmov 0   ;;  %v3026_v1 = vmov 0.0   ;;  %vm89_vm1 = vcmask 130048  }
  0x49   :  { %2586 = vmatprep.subr.bf16.mxu0 %v3024_v0  ;;  %2140 = vmatprep.mubr.msk.f32.mxu0 %vm3025_vm0, %v3026_v1  ;;  %v80_v2 = vld [vmem:[#allocation4] sm:$0xff]  ;;  %v81_v3 = vld [vmem:[#allocation4 + $0x8] sm:$0xff]  ;;  %v79_v4 = vld [vmem:[#allocation2] sm:$0xff] }
  0x4a   :  { %2577 = vmatprep.subr.bf16.mxu1 %v3024_v0  ;;  %2119 = vmatprep.mubr.msk.f32.mxu1 %vm3025_vm0, %v3026_v1  ;;  %v94_v5 = vand.u32 4294901760, %v80_v2  ;;  %v97_v6 = vand.u32 4294901760, %v81_v3  ;;  %v91_v7 = vsel %vm89_vm1, %v79_v4, 0  ;;  %v553_v8 = vld [vmem:[#allocation6] sm:$0xff]  ;;  %v554_v9 = vld [vmem:[#allocation6 + $0x8] sm:$0xff]  ;;  %v555_v10 = vld [vmem:[#allocation6 + $0x10] sm:$0xff] }
  0x4b   :  { %v160_v11 = vand.u32 4294901760, %v91_v7  ;;  %v577_v12 = vand.u32 4294901760, %v553_v8  ;;  %v580_v13 = vand.u32 4294901760, %v554_v9  ;;  %v556_v14 = vld [vmem:[#allocation6 + $0x18] sm:$0xff]  ;;  %v583_v18 = vand.u32 4294901760, %v555_v10  ;;  %v557_v19 = vld [vmem:[#allocation6 + $0x20] sm:$0xff] }
  0x4c   :  { %v2578_v15 = vpack.c.bf16 %v97_v6, %v94_v5  ;;  %v172_v16 = vsub.f32 %v80_v2, %v94_v5  ;;  %v179_v17 = vsub.f32 %v81_v3, %v97_v6  ;;  %v586_v23 = vand.u32 4294901760, %v556_v14  ;;  %v558_v24 = vld [vmem:[#allocation6 + $0x28] sm:$0xff]  ;;  %v559_v46 = vld [vmem:[#allocation6 + $0x30] sm:$0xff]  ;;  %v560_v47 = vld [vmem:[#allocation6 + $0x38] sm:$0xff] }
  0x4d   :  { %v161_v20 = vsub.f32 %v91_v7, %v160_v11  ;;  %v3130_v21 = vsub.f32 %v553_v8, %v577_v12  ;;  %v3132_v22 = vsub.f32 %v554_v9, %v580_v13  ;;  %v3136_v28 = vsub.f32 %v555_v10, %v583_v18  ;;  %v561_v51 = vld [vmem:[#allocation6 + $0x40] sm:$0xff]  ;;  %v562_v52 = vld [vmem:[#allocation6 + $0x48] sm:$0xff]  ;;  %v563_v58 = vld [vmem:[#allocation6 + $0x50] sm:$0xff] }
  0x4e   :  { %2588 = vmatpush3.bf16.msra.mxu0 %v2578_v15  ;;  %2579 = vmatpush3.bf16.msra.mxu1 %v2578_v15  ;;  %v173_v25 = vand.u32 4294901760, %v172_v16  ;;  %v180_v26 = vand.u32 4294901760, %v179_v17  ;;  %v3138_v29 = vsub.f32 %v556_v14, %v586_v23  ;;  %v589_v30 = vand.u32 4294901760, %v557_v19  ;;  %v564_v59 = vld [vmem:[#allocation6 + $0x58] sm:$0xff]  ;;  %v565_v63 = vld [vmem:[#allocation6 + $0x60] sm:$0xff]  ;;  %v566_v2 = vld [vmem:[#allocation6 + $0x68] sm:$0xff] }
  0x4f   :  { %v162_v27 = vand.u32 4294901760, %v161_v20  ;;  %2580 = vmatprep.subr.bf16.mxu1 %v3024_v0  ;;  %2589 = vmatprep.subr.bf16.mxu0 %v3024_v0  ;;  %v592_v34 = vand.u32 4294901760, %v558_v24  ;;  %v2584_v42 = vpack.c.bf16 %v179_v17, %v172_v16  ;;  %v3156_v43 = vpack.c.bf16 %v580_v13, %v577_v12  ;;  %v567_v6 = vld [vmem:[#allocation6 + $0x70] sm:$0xff]  ;;  %v568_v7 = vld [vmem:[#allocation6 + $0x78] sm:$0xff] }
  0x50   :  { %v174_v31 = vsub.f32 %v172_v16, %v173_v25  ;;  %v181_v32 = vsub.f32 %v179_v17, %v180_v26  ;;  %v2590_v33 = vpack.c.bf16 %v180_v26, %v173_v25  ;;  %v3140_v36 = vsub.f32 %v557_v19, %v589_v30 }
  0x51   :  { %2141 = vmatmul.mubr.f32.vlgmr.msra.gmra.mrb[0].mxu0 %v162_v27  ;;  %v163_v35 = vsub.f32 %v161_v20, %v162_v27  ;;  %v3144_v39 = vsub.f32 %v558_v24, %v592_v34  ;;  %v3161_v44 = vpack.c.bf16 %v586_v23, %v583_v18  ;;  %v3167_v45 = vpack.c.bf16 %v592_v34, %v589_v30 }
  0x52   :  { %v175_v37 = vand.u32 4294901760, %v174_v31  ;;  %v182_v38 = vand.u32 4294901760, %v181_v32  ;;  %2591 = vmatpush3.bf16.msra.mxu0 %v2590_v33  ;;  %2147 = vmatprep.mubr.msk.f32.mxu0 %vm3025_vm0, %v3026_v1  ;;  %v595_v48 = vand.u32 4294901760, %v559_v46  ;;  %v598_v49 = vand.u32 4294901760, %v560_v47 }
  0x53   :  { %v164_v40 = vand.u32 4294901760, %v163_v35  ;;  %2592 = vmatprep.subr.bf16.mxu0 %v3024_v0  ;;  %v601_v55 = vand.u32 4294901760, %v561_v51  ;;  %v604_v56 = vand.u32 4294901760, %v562_v52  ;;  %v607_v60 = vand.u32 4294901760, %v563_v58 }
  0x54   :  { %v2581_v41 = vpack.c.bf16 %v182_v38, %v175_v37  ;;  %v3172_v50 = vpack.c.bf16 %v598_v49, %v595_v48  ;;  %v3175_v53 = vsub.f32 %v559_v46, %v595_v48  ;;  %v3177_v54 = vsub.f32 %v560_v47, %v598_v49 }
  0x55   :  { %2120 = vmatmul.mubr.f32.vlgmr.msra.gmra.mrb[0].mxu1 %v164_v40  ;;  %v3180_v57 = vpack.c.bf16 %v604_v56, %v601_v55  ;;  %v610_v61 = vand.u32 4294901760, %v564_v59  ;;  %v613_v3 = vand.u32 4294901760, %v565_v63  ;;  %v616_v4 = vand.u32 4294901760, %v566_v2 }
  0x56   :  { %2582 = vmatpush3.bf16.msra.mxu1 %v2581_v41  ;;  %2126 = vmatprep.mubr.msk.f32.mxu1 %vm3025_vm0, %v3026_v1  ;;  %v619_v8 = vand.u32 4294901760, %v567_v6  ;;  %v622_v9 = vand.u32 4294901760, %v568_v7  ;;  %v670_v10 = vand.u32 4294901760, %v3130_v21  ;;  %v3194_v12 = vsub.f32 %v561_v51, %v601_v55 }
  0x57   :  { %2583 = vmatprep.subr.bf16.mxu1 %v3024_v0  ;;  %v3184_v62 = vpack.c.bf16 %v610_v61, %v607_v60  ;;  %v3188_v5 = vpack.c.bf16 %v616_v4, %v613_v3  ;;  %v3196_v13 = vsub.f32 %v562_v52, %v604_v56  ;;  %v3198_v14 = vsub.f32 %v563_v58, %v607_v60 }
  0x58   :  { %v3202_v16 = vsub.f32 %v565_v63, %v613_v3  ;;  %v3204_v17 = vsub.f32 %v566_v2, %v616_v4  ;;  %v3206_v18 = vpack.c.bf16 %v622_v9, %v619_v8  ;;  %v3208_v19 = vsub.f32 %v567_v6, %v619_v8 }
  0x59   :  { %2148 = vmatmul.mubr.f32.vlgmr.msra.gmra.mrb[0].mxu0 %v160_v11  ;;  %v671_v23 = vsub.f32 %v3130_v21, %v670_v10  ;;  %v684_v25 = vand.u32 4294901760, %v3136_v28  ;;  %v691_v26 = vand.u32 4294901760, %v3138_v29  ;;  %v3712_v37 = vand.u32 4294901760, %v3140_v36 }
  0x5a   :  { %2594 = vmatpush3.bf16.msra.mxu0 %v2578_v15  ;;  %2154 = vmatprep.mubr.msk.f32.mxu0 %vm3025_vm0, %v3026_v1  ;;  %v3200_v15 = vsub.f32 %v564_v59, %v610_v61  ;;  %v3711_v38 = vand.u32 4294901760, %v3144_v39  ;;  %v3710_v48 = vand.u32 4294901760, %v3175_v53  ;;  %v3709_v49 = vand.u32 4294901760, %v3177_v54 }
  0x5b   :  { %2739 = vmatprep.subr.bf16.mxu0 %v3024_v0  ;;  %v672_v27 = vand.u32 4294901760, %v671_v23  ;;  %v685_v31 = vsub.f32 %v3136_v28, %v684_v25  ;;  %v692_v32 = vsub.f32 %v3138_v29, %v691_v26  ;;  %v699_v41 = vsub.f32 %v3140_v36, %v3712_v37 }
  0x5c   :  { %v713_v52 = vsub.f32 %v3175_v53, %v3710_v48  ;;  %v720_v55 = vsub.f32 %v3177_v54, %v3709_v49  ;;  %v3708_v59 = vand.u32 4294901760, %v3194_v12  ;;  %v3707_v60 = vand.u32 4294901760, %v3196_v13 }
  0x5d   :  { %2127 = vmatmul.mubr.f32.vlgmr.msra.gmra.mrb[0].mxu1 %v160_v11  ;;  %v686_v34 = vand.u32 4294901760, %v685_v31  ;;  %v693_v35 = vand.u32 4294901760, %v692_v32  ;;  %v700_v46 = vand.u32 4294901760, %v699_v41  ;;  %v3706_v6 = vand.u32 4294901760, %v3198_v14 }
  0x5e   :  { %2585 = vmatpush3.bf16.msra.mxu1 %v2584_v42  ;;  %2133 = vmatprep.mubr.msk.f32.mxu1 %vm3025_vm0, %v3026_v1  ;;  %v706_v42 = vsub.f32 %v3144_v39, %v3711_v38  ;;  %v714_v56 = vand.u32 4294901760, %v713_v52  ;;  %v721_v58 = vand.u32 4294901760, %v720_v55  ;;  %v727_v63 = vsub.f32 %v3194_v12, %v3708_v59  ;;  %v1227_v59 = vld [vmem:[#allocation7 + $0x48] sm:$0xff] }
  0x5f   :  { %2595 = vmatprep.subr.bf16.mxu1 %v3024_v0  ;;  %v3232_v40 = vpack.c.bf16 %v693_v35, %v686_v34  ;;  %v734_v2 = vsub.f32 %v3196_v13, %v3707_v60  ;;  %v3703_v31 = vand.u32 4294901760, %v3204_v17 }
  0x60   :  { %v707_v47 = vand.u32 4294901760, %v706_v42  ;;  %v2629_v61 = vpack.c.bf16 %v721_v58, %v714_v56  ;;  %v728_v3 = vand.u32 4294901760, %v727_v63 }
  0x61   :  { %2155 = vmatmul.mubr.f32.vlgmr.msra.gmra.mrb[0].mxu0 %v160_v11  ;;  %v677_v11 = vand.u32 4294901760, %v3132_v22  ;;  %v735_v4 = vand.u32 4294901760, %v734_v2  ;;  %v762_v35 = vsub.f32 %v3204_v17, %v3703_v31 }
  0x62   :  { %2399 = vmatprep.mubr.msk.f32.mxu0 %vm3025_vm0, %v3026_v1  ;;  %v2626_v51 = vpack.c.bf16 %v707_v47, %v700_v46  ;;  %v3702_v46 = vand.u32 4294901760, %v3208_v19 }
  0x63   :  { %v678_v24 = vsub.f32 %v3132_v22, %v677_v11  ;;  %v2632_v8 = vpack.c.bf16 %v735_v4, %v728_v3  ;;  %v763_v42 = vand.u32 4294901760, %v762_v35  ;;  %v2644_v3 = vpack.c.bf16 %v3132_v22, %v3130_v21 }
  0x64   :  { %v769_v55 = vsub.f32 %v3208_v19, %v3702_v46  ;;  %v2647_v4 = vpack.c.bf16 %v3138_v29, %v3136_v28  ;;  %v3717_v21 = vand.u32 4294901760, %v3140_v36  ;;  %v3718_v22 = vand.u32 4294901760, %v3144_v39 }
  0x65   :  { %2134 = vmatmul.mubr.f32.vlgmr.msra.gmra.mrb[0].mxu1 %v161_v20  ;;  %v3210_v20 = vsub.f32 %v568_v7, %v622_v9  ;;  %v679_v30 = vand.u32 4294901760, %v678_v24  ;;  %v3705_v7 = vand.u32 4294901760, %v3200_v15  ;;  %v741_v9 = vsub.f32 %v3198_v14, %v3706_v6 }
  0x66   :  { %2597 = vmatpush3.bf16.msra.mxu1 %v3156_v43  ;;  %2189 = vmatprep.mubr.msk.f32.mxu1 %vm3025_vm0, %v3026_v1  ;;  %v770_v58 = vand.u32 4294901760, %v769_v55  ;;  %v1890_v55 = vld [vmem:[%s3695_s2] ss:$0 sm:$0xff]  ;;  %v3720_v28 = vand.u32 4294901760, %v3177_v54 }
  0x67   :  { %2598 = vmatprep.subr.bf16.mxu1 %v3024_v0  ;;  %v3228_v33 = vpack.c.bf16 %v679_v30, %v672_v27  ;;  %v748_v23 = vsub.f32 %v3200_v15, %v3705_v7  ;;  %v742_v24 = vand.u32 4294901760, %v741_v9  ;;  %v3704_v30 = vand.u32 4294901760, %v3202_v16 }
  0x68   :  { %v3701_v47 = vand.u32 4294901760, %v3210_v20  ;;  %v2650_v9 = vpack.c.bf16 %v3144_v39, %v3140_v36  ;;  %v2665_v35 = vpack.c.bf16 %v3210_v20, %v3208_v19  ;;  %v3723_v36 = vand.u32 4294901760, %v3198_v14 }
  0x69   :  { %v749_v27 = vand.u32 4294901760, %v748_v23  ;;  %v755_v34 = vsub.f32 %v3202_v16, %v3704_v30  ;;  %v2653_v23 = vpack.c.bf16 %v3177_v54, %v3175_v53  ;;  %v3724_v39 = vand.u32 4294901760, %v3200_v15 }
  0x6a   :  { %2600 = vmatpush3.bf16.msra.mxu1 %v3161_v44  ;;  %v776_v56 = vsub.f32 %v3210_v20, %v3701_v47  ;;  %v3726_v54 = vand.u32 4294901760, %v3204_v17 }
  0x6b   :  { %2601 = vmatprep.subr.bf16.mxu1 %v3024_v0  ;;  %v2635_v32 = vpack.c.bf16 %v749_v27, %v742_v24  ;;  %v756_v41 = vand.u32 4294901760, %v755_v34  ;;  %v2656_v24 = vpack.c.bf16 %v3196_v13, %v3194_v12  ;;  %v2659_v27 = vpack.c.bf16 %v3200_v15, %v3198_v14  ;;  %v1231_v15 = vld [vmem:[#allocation7 + $0x68] sm:$0xff] }
  0x6c   :  { %v777_v63 = vand.u32 4294901760, %v776_v56  ;;  %v2662_v34 = vpack.c.bf16 %v3204_v17, %v3202_v16  ;;  %v1232_v17 = vld [vmem:[#allocation7 + $0x70] sm:$0xff] }
  0x6d   :  { %v2638_v52 = vpack.c.bf16 %v763_v42, %v756_v41 }
  0x6e   :  { %2603 = vmatpush3.bf16.msra.mxu1 %v3167_v45  ;;  %v2641_v2 = vpack.c.bf16 %v777_v63, %v770_v58 }
  0x6f   :  { %2604 = vmatprep.subr.bf16.mxu1 %v3024_v0 }
  0x72   :  { %2606 = vmatpush3.bf16.msra.mxu1 %v3172_v50 }
  0x73   :  { %2607 = vmatprep.subr.bf16.mxu1 %v3024_v0 }
  0x76   :  { %2609 = vmatpush3.bf16.msra.mxu1 %v3180_v57 }
  0x77   :  { %2610 = vmatprep.subr.bf16.mxu1 %v3024_v0 }
  0x7a   :  { %2612 = vmatpush3.bf16.msra.mxu1 %v3184_v62 }
  0x7b   :  { %2613 = vmatprep.subr.bf16.mxu1 %v3024_v0 }
  0x7e   :  { %2615 = vmatpush3.bf16.msra.mxu1 %v3188_v5 }
  0x7f   :  { %2616 = vmatprep.subr.bf16.mxu1 %v3024_v0 }
  0x82   :  { %2618 = vmatpush3.bf16.msra.mxu1 %v3206_v18 }
  0x83   :  { %2619 = vmatprep.subr.bf16.mxu1 %v3024_v0 }
 0x134   :  { %v548_v41 = vpop.f32.mrb[0].mxu0 }
 0x135   :  { %v2156_v42 = vpop.f32.mrb[1].mxu0 }
 0x138   :  { %v323_v56 = vpop.f32.mrb[0].mxu1 }
 0x139   :  { %v2883_v58 = vadd.f32 %v1890_v55, %v323_v56  ;;  %v2135_v63 = vpop.f32.mrb[1].mxu1  ;;  %v1224_v55 = vld [vmem:[#allocation7 + $0x30] sm:$0xff]  ;;  %v1225_v56 = vld [vmem:[#allocation7 + $0x38] sm:$0xff] }
 0x13b   :  { %v2884_v47 = vadd.f32 %v2883_v58, %v548_v41  ;;  %v1226_v58 = vld [vmem:[#allocation7 + $0x40] sm:$0xff] }
 0x13d   :  { %v552_v46 = vmax.f32 %v2884_v47, 0.0  ;;  %v1223_v47 = vld [vmem:[#allocation7 + $0x28] sm:$0xff] }
 0x13e   :  { %v1257_v41 = vand.u32 4294901760, %v1223_v47 }
 0x13f   :  { %v3299_v31 = vand.u32 4294901760, %v552_v46 }
 0x140   :  { %v3342_v37 = vsub.f32 %v1223_v47, %v1257_v41 }
 0x141   :  { %v3302_v30 = vsub.f32 %v552_v46, %v3299_v31  ;;  %v1222_v46 = vld [vmem:[#allocation7 + $0x20] sm:$0xff] }
 0x143   :  { %v659_v7 = vand.u32 4294901760, %v3302_v30 }
 0x145   :  { %v660_v42 = vsub.f32 %v3302_v30, %v659_v7 }
 0x147   :  { %v661_v6 = vand.u32 4294901760, %v660_v42 }
 0x149   :  { %2190 = vmatmul.mubr.f32.vlgmr.msra.gmra.mrb[2].mxu1 %v661_v6 }
 0x14a   :  { %2621 = vmatpush3.bf16.msra.mxu1 %v3228_v33  ;;  %2224 = vmatprep.mubr.msk.f32.mxu1 %vm3025_vm0, %v3026_v1  ;;  %v1218_v33 = vld [vmem:[#allocation7] sm:$0xff] }
 0x14b   :  { %2622 = vmatprep.subr.bf16.mxu1 %v3024_v0 }
 0x14e   :  { %2624 = vmatpush3.bf16.msra.mxu1 %v3232_v40  ;;  %v1219_v40 = vld [vmem:[#allocation7 + $0x8] sm:$0xff] }
 0x14f   :  { %2625 = vmatprep.subr.bf16.mxu1 %v3024_v0  ;;  %v1245_v6 = vand.u32 4294901760, %v1219_v40 }
 0x151   :  { %v3328_v42 = vsub.f32 %v1219_v40, %v1245_v6  ;;  %v1263_v40 = vand.u32 4294901760, %v1225_v56 }
 0x152   :  { %2627 = vmatpush3.bf16.msra.mxu1 %v2626_v51  ;;  %v1220_v51 = vld [vmem:[#allocation7 + $0x10] sm:$0xff] }
 0x153   :  { %2628 = vmatprep.subr.bf16.mxu1 %v3024_v0 }
 0x156   :  { %2630 = vmatpush3.bf16.msra.mxu1 %v2629_v61  ;;  %v1242_v61 = vand.u32 4294901760, %v1218_v33 }
 0x157   :  { %2631 = vmatprep.subr.bf16.mxu1 %v3024_v0 }
 0x158   :  { %v3324_v63 = vpack.c.bf16 %v1245_v6, %v1242_v61 }
 0x15a   :  { %2633 = vmatpush3.bf16.msra.mxu1 %v2632_v8  ;;  %v1221_v8 = vld [vmem:[#allocation7 + $0x18] sm:$0xff]  ;;  %2741 = vmatpush3.bf16.msra.mxu0 %v3324_v63 }
 0x15b   :  { %2634 = vmatprep.subr.bf16.mxu1 %v3024_v0  ;;  %2742 = vmatprep.subr.bf16.mxu0 %v3024_v0 }
 0x15e   :  { %2636 = vmatpush3.bf16.msra.mxu1 %v2635_v32  ;;  %v1248_v32 = vand.u32 4294901760, %v1220_v51 }
 0x15f   :  { %2637 = vmatprep.subr.bf16.mxu1 %v3024_v0 }
 0x160   :  { %v3330_v60 = vsub.f32 %v1220_v51, %v1248_v32  ;;  %v1269_v51 = vand.u32 4294901760, %v1227_v59 }
 0x162   :  { %2639 = vmatpush3.bf16.msra.mxu1 %v2638_v52  ;;  %v1251_v52 = vand.u32 4294901760, %v1221_v8 }
 0x163   :  { %2640 = vmatprep.subr.bf16.mxu1 %v3024_v0 }
 0x164   :  { %v3332_v49 = vpack.c.bf16 %v1251_v52, %v1248_v32  ;;  %v3334_v48 = vsub.f32 %v1221_v8, %v1251_v52  ;;  %v3348_v8 = vsub.f32 %v1225_v56, %v1263_v40 }
 0x166   :  { %2642 = vmatpush3.bf16.msra.mxu1 %v2641_v2  ;;  %v1254_v2 = vand.u32 4294901760, %v1222_v46  ;;  %2744 = vmatpush3.bf16.msra.mxu0 %v3332_v49 }
 0x167   :  { %2643 = vmatprep.subr.bf16.mxu1 %v3024_v0  ;;  %2745 = vmatprep.subr.bf16.mxu0 %v3024_v0 }
 0x168   :  { %v3336_v38 = vsub.f32 %v1222_v46, %v1254_v2  ;;  %v3352_v46 = vsub.f32 %v1227_v59, %v1269_v51 }
 0x169   :  { %2225 = vmatmul.mubr.f32.vlgmr.msra.gmra.mrb[2].mxu1 %v3299_v31 }
 0x16a   :  { %2645 = vmatpush3.bf16.msra.mxu1 %v2644_v3  ;;  %2259 = vmatprep.mubr.msk.f32.mxu1 %vm3025_vm0, %v3026_v1  ;;  %v3326_v3 = vsub.f32 %v1218_v33, %v1242_v61  ;;  %v1260_v33 = vand.u32 4294901760, %v1224_v55  ;;  %v1266_v61 = vand.u32 4294901760, %v1226_v58 }
 0x16b   :  { %2646 = vmatprep.subr.bf16.mxu1 %v3024_v0 }
 0x16c   :  { %v3346_v6 = vsub.f32 %v1224_v55, %v1260_v33  ;;  %v3350_v32 = vsub.f32 %v1226_v58, %v1266_v61  ;;  %v3366_v59 = vpack.c.bf16 %v1263_v40, %v1260_v33 }
 0x16e   :  { %2648 = vmatpush3.bf16.msra.mxu1 %v2647_v4  ;;  %v3358_v4 = vpack.c.bf16 %v1257_v41, %v1254_v2 }
 0x16f   :  { %2649 = vmatprep.subr.bf16.mxu1 %v3024_v0 }
 0x170   :  { %2747 = vmatpush3.bf16.msra.mxu0 %v3358_v4 }
 0x171   :  { %2748 = vmatprep.subr.bf16.mxu0 %v3024_v0 }
 0x172   :  { %2651 = vmatpush3.bf16.msra.mxu1 %v2650_v9  ;;  %v3374_v9 = vpack.c.bf16 %v1269_v51, %v1266_v61 }
 0x173   :  { %2652 = vmatprep.subr.bf16.mxu1 %v3024_v0 }
 0x174   :  { %2750 = vmatpush3.bf16.msra.mxu0 %v3366_v59 }
 0x175   :  { %2751 = vmatprep.subr.bf16.mxu0 %v3024_v0 }
 0x176   :  { %2654 = vmatpush3.bf16.msra.mxu1 %v2653_v23  ;;  %v2692_v23 = vpack.c.bf16 %v677_v11, %v670_v10  ;;  %v2698_v10 = vpack.c.bf16 %v3718_v22, %v3717_v21  ;;  %v3719_v11 = vand.u32 4294901760, %v3175_v53  ;;  %v3725_v53 = vand.u32 4294901760, %v3202_v16 }
 0x177   :  { %2655 = vmatprep.subr.bf16.mxu1 %v3024_v0  ;;  %v1281_v16 = vand.u32 4294901760, %v1231_v15 }
 0x178   :  { %2753 = vmatpush3.bf16.msra.mxu0 %v3374_v9  ;;  %v2701_v29 = vpack.c.bf16 %v3720_v28, %v3719_v11  ;;  %v1363_v11 = vand.u32 4294901760, %v3336_v38  ;;  %v1370_v28 = vand.u32 4294901760, %v3342_v37 }
 0x179   :  { %2754 = vmatprep.subr.bf16.mxu0 %v3024_v0  ;;  %v3498_v58 = vsub.f32 %v1231_v15, %v1281_v16 }
 0x17a   :  { %2657 = vmatpush3.bf16.msra.mxu1 %v2656_v24  ;;  %v2695_v24 = vpack.c.bf16 %v691_v26, %v684_v25  ;;  %v3721_v25 = vand.u32 4294901760, %v3194_v12  ;;  %v3722_v26 = vand.u32 4294901760, %v3196_v13  ;;  %v3727_v12 = vand.u32 4294901760, %v3208_v19 }
 0x17b   :  { %2658 = vmatprep.subr.bf16.mxu1 %v3024_v0  ;;  %v3728_v13 = vand.u32 4294901760, %v3210_v20  ;;  %v1284_v19 = vand.u32 4294901760, %v1232_v17 }
 0x17d   :  { %v3501_v33 = vsub.f32 %v1232_v17, %v1284_v19 }
 0x17e   :  { %2660 = vmatpush3.bf16.msra.mxu1 %v2659_v27  ;;  %v2710_v27 = vpack.c.bf16 %v3726_v54, %v3725_v53  ;;  %v1377_v53 = vand.u32 4294901760, %v3346_v6  ;;  %v1384_v54 = vand.u32 4294901760, %v3348_v8 }
 0x17f   :  { %2661 = vmatprep.subr.bf16.mxu1 %v3024_v0 }
 0x182   :  { %2663 = vmatpush3.bf16.msra.mxu1 %v2662_v34  ;;  %v2713_v34 = vpack.c.bf16 %v3728_v13, %v3727_v12  ;;  %v1378_v12 = vsub.f32 %v3346_v6, %v1377_v53  ;;  %v1385_v13 = vsub.f32 %v3348_v8, %v1384_v54 }
 0x183   :  { %2664 = vmatprep.subr.bf16.mxu1 %v3024_v0 }
 0x186   :  { %2666 = vmatpush3.bf16.msra.mxu1 %v2665_v35  ;;  %v1342_v35 = vand.u32 4294901760, %v3328_v42 }
 0x187   :  { %2667 = vmatprep.subr.bf16.mxu1 %v3024_v0 }
 0x188   :  { %v1343_v2 = vsub.f32 %v3328_v42, %v1342_v35 }
 0x189   :  { %2260 = vmatmul.mubr.f32.vlgmr.msra.gmra.mrb[2].mxu1 %v3302_v30  ;;  %v2707_v30 = vpack.c.bf16 %v3724_v39, %v3723_v36 }
 0x18a   :  { %2669 = vmatpush3.bf16.msra.mxu1 %v3156_v43  ;;  %2294 = vmatprep.mubr.msk.f32.mxu1 %vm3025_vm0, %v3026_v1  ;;  %v1344_v51 = vand.u32 4294901760, %v1343_v2 }
 0x18b   :  { %2670 = vmatprep.subr.bf16.mxu1 %v3024_v0 }
 0x18e   :  { %2672 = vmatpush3.bf16.msra.mxu1 %v3161_v44 }
 0x18f   :  { %2673 = vmatprep.subr.bf16.mxu1 %v3024_v0 }
 0x192   :  { %2675 = vmatpush3.bf16.msra.mxu1 %v3167_v45 }
 0x193   :  { %2676 = vmatprep.subr.bf16.mxu1 %v3024_v0 }
 0x196   :  { %2678 = vmatpush3.bf16.msra.mxu1 %v3172_v50 }
 0x197   :  { %2679 = vmatprep.subr.bf16.mxu1 %v3024_v0 }
 0x19a   :  { %2681 = vmatpush3.bf16.msra.mxu1 %v3180_v57 }
 0x19b   :  { %2682 = vmatprep.subr.bf16.mxu1 %v3024_v0 }
 0x19e   :  { %2684 = vmatpush3.bf16.msra.mxu1 %v3184_v62 }
 0x19f   :  { %2685 = vmatprep.subr.bf16.mxu1 %v3024_v0 }
 0x1a2   :  { %2687 = vmatpush3.bf16.msra.mxu1 %v3188_v5 }
 0x1a3   :  { %2688 = vmatprep.subr.bf16.mxu1 %v3024_v0 }
 0x1a6   :  { %2690 = vmatpush3.bf16.msra.mxu1 %v3206_v18 }
 0x1a7   :  { %2691 = vmatprep.subr.bf16.mxu1 %v3024_v0 }
 0x1a9   :  { %2295 = vmatmul.mubr.f32.vlgmr.msra.gmra.mrb[2].mxu1 %v659_v7  ;;  %v2704_v7 = vpack.c.bf16 %v3722_v26, %v3721_v25  ;;  %v1364_v26 = vsub.f32 %v3336_v38, %v1363_v11 }
 0x1aa   :  { %2693 = vmatpush3.bf16.msra.mxu1 %v2692_v23  ;;  %2329 = vmatprep.mubr.msk.f32.mxu1 %vm3025_vm0, %v3026_v1  ;;  %v1349_v23 = vand.u32 4294901760, %v3330_v60 }
 0x1ab   :  { %2694 = vmatprep.subr.bf16.mxu1 %v3024_v0  ;;  %v1365_v39 = vand.u32 4294901760, %v1364_v26 }
 0x1ac   :  { %v1350_v22 = vsub.f32 %v3330_v60, %v1349_v23 }
 0x1ae   :  { %2696 = vmatpush3.bf16.msra.mxu1 %v2695_v24  ;;  %v1356_v24 = vand.u32 4294901760, %v3334_v48 }
 0x1af   :  { %2697 = vmatprep.subr.bf16.mxu1 %v3024_v0 }
 0x1b2   :  { %2699 = vmatpush3.bf16.msra.mxu1 %v2698_v10  ;;  %v1357_v10 = vsub.f32 %v3334_v48, %v1356_v24 }
 0x1b3   :  { %2700 = vmatprep.subr.bf16.mxu1 %v3024_v0 }
 0x1b4   :  { %v1358_v25 = vand.u32 4294901760, %v1357_v10 }
 0x1b6   :  { %2702 = vmatpush3.bf16.msra.mxu1 %v2701_v29  ;;  %v1351_v29 = vand.u32 4294901760, %v1350_v22  ;;  %v3715_v22 = vand.u32 4294901760, %v3498_v58 }
 0x1b7   :  { %2703 = vmatprep.subr.bf16.mxu1 %v3024_v0 }
 0x1b8   :  { %v2767_v36 = vpack.c.bf16 %v1358_v25, %v1351_v29  ;;  %v1427_v25 = vsub.f32 %v3498_v58, %v3715_v22 }
 0x1ba   :  { %2705 = vmatpush3.bf16.msra.mxu1 %v2704_v7  ;;  %v1371_v7 = vsub.f32 %v3342_v37, %v1370_v28 }
 0x1bb   :  { %2706 = vmatprep.subr.bf16.mxu1 %v3024_v0 }
 0x1be   :  { %2708 = vmatpush3.bf16.msra.mxu1 %v2707_v30  ;;  %v1372_v30 = vand.u32 4294901760, %v1371_v7  ;;  %v1428_v7 = vand.u32 4294901760, %v1427_v25 }
 0x1bf   :  { %2709 = vmatprep.subr.bf16.mxu1 %v3024_v0 }
 0x1c2   :  { %2711 = vmatpush3.bf16.msra.mxu1 %v2710_v27  ;;  %v2770_v27 = vpack.c.bf16 %v1372_v30, %v1365_v39  ;;  %v3714_v39 = vand.u32 4294901760, %v3501_v33 }
 0x1c3   :  { %2712 = vmatprep.subr.bf16.mxu1 %v3024_v0 }
 0x1c6   :  { %2714 = vmatpush3.bf16.msra.mxu1 %v2713_v34  ;;  %v1379_v34 = vand.u32 4294901760, %v1378_v12 }
 0x1c7   :  { %2715 = vmatprep.subr.bf16.mxu1 %v3024_v0 }
 0x1c9   :  { %2330 = vmatmul.mubr.f32.vlgmr.msra.gmra.mrb[2].mxu1 %v3299_v31 }
 0x1ca   :  { %2717 = vmatpush3.bf16.msra.mxu1 %v3156_v43  ;;  %2364 = vmatprep.mubr.msk.f32.mxu1 %vm3025_vm0, %v3026_v1  ;;  %v1228_v43 = vld [vmem:[#allocation7 + $0x50] sm:$0xff] }
 0x1cb   :  { %2718 = vmatprep.subr.bf16.mxu1 %v3024_v0 }
 0x1ce   :  { %2720 = vmatpush3.bf16.msra.mxu1 %v3161_v44  ;;  %v1229_v44 = vld [vmem:[#allocation7 + $0x58] sm:$0xff] }
 0x1cf   :  { %2721 = vmatprep.subr.bf16.mxu1 %v3024_v0 }
 0x1d2   :  { %2723 = vmatpush3.bf16.msra.mxu1 %v3167_v45  ;;  %v1272_v45 = vand.u32 4294901760, %v1228_v43 }
 0x1d3   :  { %2724 = vmatprep.subr.bf16.mxu1 %v3024_v0 }
 0x1d4   :  { %v3492_v41 = vsub.f32 %v1228_v43, %v1272_v45  ;;  %v1386_v43 = vand.u32 4294901760, %v1385_v13  ;;  %v1434_v13 = vsub.f32 %v3501_v33, %v3714_v39 }
 0x1d6   :  { %2726 = vmatpush3.bf16.msra.mxu1 %v3172_v50  ;;  %v1275_v50 = vand.u32 4294901760, %v1229_v44  ;;  %v1405_v17 = vand.u32 4294901760, %v3492_v41 }
 0x1d7   :  { %2727 = vmatprep.subr.bf16.mxu1 %v3024_v0 }
 0x1d8   :  { %v3474_v14 = vpack.c.bf16 %v1275_v50, %v1272_v45  ;;  %v3494_v55 = vsub.f32 %v1229_v44, %v1275_v50  ;;  %v1391_v44 = vand.u32 4294901760, %v3350_v32  ;;  %v1398_v45 = vand.u32 4294901760, %v3352_v46 }
 0x1d9   :  { %v2773_v50 = vpack.c.bf16 %v1386_v43, %v1379_v34  ;;  %v1435_v43 = vand.u32 4294901760, %v1434_v13 }
 0x1da   :  { %2729 = vmatpush3.bf16.msra.mxu1 %v3180_v57  ;;  %v1230_v57 = vld [vmem:[#allocation7 + $0x60] sm:$0xff]  ;;  %2756 = vmatpush3.bf16.msra.mxu0 %v3474_v14  ;;  %v1399_v15 = vsub.f32 %v3352_v46, %v1398_v45 }
 0x1db   :  { %2730 = vmatprep.subr.bf16.mxu1 %v3024_v0  ;;  %2757 = vmatprep.subr.bf16.mxu0 %v3024_v0 }
 0x1de   :  { %2732 = vmatpush3.bf16.msra.mxu1 %v3184_v62  ;;  %v1278_v62 = vand.u32 4294901760, %v1230_v57 }
 0x1df   :  { %2733 = vmatprep.subr.bf16.mxu1 %v3024_v0 }
 0x1e0   :  { %v3496_v56 = vsub.f32 %v1230_v57, %v1278_v62  ;;  %v1392_v57 = vsub.f32 %v3350_v32, %v1391_v44 }
 0x1e2   :  { %2735 = vmatpush3.bf16.msra.mxu1 %v3188_v5  ;;  %v3478_v5 = vpack.c.bf16 %v1281_v16, %v1278_v62  ;;  %v1393_v62 = vand.u32 4294901760, %v1392_v57  ;;  %v1400_v16 = vand.u32 4294901760, %v1399_v15 }
 0x1e3   :  { %2736 = vmatprep.subr.bf16.mxu1 %v3024_v0 }
 0x1e4   :  { %2759 = vmatpush3.bf16.msra.mxu0 %v3478_v5 }
 0x1e5   :  { %2760 = vmatprep.subr.bf16.mxu0 %v3024_v0 }
 0x1e6   :  { %2738 = vmatpush3.bf16.msra.mxu1 %v3206_v18  ;;  %v1233_v18 = vld [vmem:[#allocation7 + $0x78] sm:$0xff] }
 0x1e7   :  { %v1287_v20 = vand.u32 4294901760, %v1233_v18 }
 0x1e9   :  { %2365 = vmatmul.mubr.f32.vlgmr.msra.gmra.mrb[2].mxu1 %v3299_v31  ;;  %v1335_v31 = vand.u32 4294901760, %v3326_v3  ;;  %v3484_v47 = vpack.c.bf16 %v1287_v20, %v1284_v19  ;;  %v3503_v40 = vsub.f32 %v1233_v18, %v1287_v20  ;;  %v1412_v18 = vand.u32 4294901760, %v3494_v55 }
 0x1ea   :  { %v2776_v19 = vpack.c.bf16 %v1400_v16, %v1393_v62  ;;  %v1406_v20 = vsub.f32 %v3492_v41, %v1405_v17  ;;  %v2788_v62 = vpack.c.bf16 %v3328_v42, %v3326_v3  ;;  %v2791_v16 = vpack.c.bf16 %v3334_v48, %v3330_v60 }
 0x1eb   :  { %v1336_v52 = vsub.f32 %v3326_v3, %v1335_v31  ;;  %2762 = vmatpush3.bf16.msra.mxu0 %v3484_v47  ;;  %v3713_v30 = vand.u32 4294901760, %v3503_v40  ;;  %v2809_v25 = vpack.c.bf16 %v3503_v40, %v3501_v33  ;;  %v2842_v3 = vpack.c.bf16 %v1370_v28, %v1363_v11 }
 0x1ec   :  { %2763 = vmatprep.subr.bf16.mxu0 %v3024_v0  ;;  %v1407_v2 = vand.u32 4294901760, %v1406_v20  ;;  %v2794_v20 = vpack.c.bf16 %v3342_v37, %v3336_v38  ;;  %v2845_v48 = vpack.c.bf16 %v1384_v54, %v1377_v53  ;;  %v2848_v60 = vpack.c.bf16 %v1398_v45, %v1391_v44 }
 0x1ed   :  { %v1337_v61 = vand.u32 4294901760, %v1336_v52  ;;  %v1413_v52 = vsub.f32 %v3494_v55, %v1412_v18  ;;  %v1441_v34 = vsub.f32 %v3503_v40, %v3713_v30  ;;  %v2851_v37 = vpack.c.bf16 %v1412_v18, %v1405_v17 }
 0x1ee   :  { %v3729_v38 = vand.u32 4294901760, %v3496_v56  ;;  %v3730_v42 = vand.u32 4294901760, %v3498_v58 }
 0x1ef   :  { %v3508_v21 = vpack.c.bf16 %v1344_v51, %v1337_v61  ;;  %v1414_v61 = vand.u32 4294901760, %v1413_v52  ;;  %v3716_v51 = vand.u32 4294901760, %v3496_v56  ;;  %v1442_v57 = vand.u32 4294901760, %v1441_v34 }
 0x1f0   :  { %v2797_v52 = vpack.c.bf16 %v3348_v8, %v3346_v6  ;;  %v2854_v6 = vpack.c.bf16 %v3730_v42, %v3729_v38  ;;  %v3731_v8 = vand.u32 4294901760, %v3501_v33 }
 0x1f1   :  { %v2779_v10 = vpack.c.bf16 %v1414_v61, %v1407_v2  ;;  %v1420_v29 = vsub.f32 %v3496_v56, %v3716_v51  ;;  %v2785_v15 = vpack.c.bf16 %v1442_v57, %v1435_v43  ;;  %v2800_v2 = vpack.c.bf16 %v3352_v46, %v3350_v32 }
 0x1f2   :  { %v2803_v61 = vpack.c.bf16 %v3494_v55, %v3492_v41  ;;  %v3732_v32 = vand.u32 4294901760, %v3503_v40 }
 0x1f3   :  { %v1421_v26 = vand.u32 4294901760, %v1420_v29  ;;  %v2806_v29 = vpack.c.bf16 %v3498_v58, %v3496_v56 }
 0x1f4   :  { %v2857_v46 = vpack.c.bf16 %v3732_v32, %v3731_v8 }
 0x1f5   :  { %v2782_v12 = vpack.c.bf16 %v1428_v7, %v1421_v26  ;;  %v1891_v26 = vld [vmem:[%s3697_s4] ss:$0 sm:$0xff] }
 0x2bc   :  { %v1213_v7 = vpop.f32.mrb[2].mxu1 }
 0x2bd   :  { %v2885_v13 = vadd.f32 %v1891_v26, %v1213_v7  ;;  %v2366_v34 = vpop.f32.mrb[3].mxu1 }
 0x2bf   :  { %v1217_v43 = vmax.f32 %v2885_v13, 0.0 }
 0x2c1   :  { %v3583_v57 = vand.u32 4294901760, %v1217_v43 }
 0x2c3   :  { %v1323_v30 = vsub.f32 %v1217_v43, %v3583_v57 }
 0x2c5   :  { %v1324_v39 = vand.u32 4294901760, %v1323_v30 }
 0x2c7   :  { %v1325_v22 = vsub.f32 %v1323_v30, %v1324_v39 }
 0x2c9   :  { %v1326_v51 = vand.u32 4294901760, %v1325_v22 }
 0x2cb   :  { %2400 = vmatmul.mubr.f32.vlgmr.msra.gmra.mrb[2].mxu0 %v1326_v51 }
 0x2cc   :  { %2765 = vmatpush3.bf16.msra.mxu0 %v3508_v21  ;;  %2434 = vmatprep.mubr.msk.f32.mxu0 %vm3025_vm0, %v3026_v1  ;;  %v2836_v21 = vpack.c.bf16 %v1342_v35, %v1335_v31 }
 0x2cd   :  { %2766 = vmatprep.subr.bf16.mxu0 %v3024_v0 }
 0x2d0   :  { %2768 = vmatpush3.bf16.msra.mxu0 %v2767_v36  ;;  %v2839_v36 = vpack.c.bf16 %v1356_v24, %v1349_v23 }
 0x2d1   :  { %2769 = vmatprep.subr.bf16.mxu0 %v3024_v0 }
 0x2d4   :  { %2771 = vmatpush3.bf16.msra.mxu0 %v2770_v27 }
 0x2d5   :  { %2772 = vmatprep.subr.bf16.mxu0 %v3024_v0 }
 0x2d8   :  { %2774 = vmatpush3.bf16.msra.mxu0 %v2773_v50 }
 0x2d9   :  { %2775 = vmatprep.subr.bf16.mxu0 %v3024_v0 }
 0x2dc   :  { %2777 = vmatpush3.bf16.msra.mxu0 %v2776_v19 }
 0x2dd   :  { %2778 = vmatprep.subr.bf16.mxu0 %v3024_v0 }
 0x2e0   :  { %2780 = vmatpush3.bf16.msra.mxu0 %v2779_v10 }
 0x2e1   :  { %2781 = vmatprep.subr.bf16.mxu0 %v3024_v0 }
 0x2e4   :  { %2783 = vmatpush3.bf16.msra.mxu0 %v2782_v12 }
 0x2e5   :  { %2784 = vmatprep.subr.bf16.mxu0 %v3024_v0 }
 0x2e8   :  { %2786 = vmatpush3.bf16.msra.mxu0 %v2785_v15 }
 0x2e9   :  { %2787 = vmatprep.subr.bf16.mxu0 %v3024_v0 }
 0x2eb   :  { %2435 = vmatmul.mubr.f32.vlgmr.msra.gmra.mrb[2].mxu0 %v3583_v57 }
 0x2ec   :  { %2789 = vmatpush3.bf16.msra.mxu0 %v2788_v62  ;;  %2469 = vmatprep.mubr.msk.f32.mxu0 %vm3025_vm0, %v3026_v1 }
 0x2ed   :  { %2790 = vmatprep.subr.bf16.mxu0 %v3024_v0 }
 0x2f0   :  { %2792 = vmatpush3.bf16.msra.mxu0 %v2791_v16 }
 0x2f1   :  { %2793 = vmatprep.subr.bf16.mxu0 %v3024_v0 }
 0x2f4   :  { %2795 = vmatpush3.bf16.msra.mxu0 %v2794_v20 }
 0x2f5   :  { %2796 = vmatprep.subr.bf16.mxu0 %v3024_v0 }
 0x2f8   :  { %2798 = vmatpush3.bf16.msra.mxu0 %v2797_v52 }
 0x2f9   :  { %2799 = vmatprep.subr.bf16.mxu0 %v3024_v0 }
 0x2fc   :  { %2801 = vmatpush3.bf16.msra.mxu0 %v2800_v2 }
 0x2fd   :  { %2802 = vmatprep.subr.bf16.mxu0 %v3024_v0 }
 0x300   :  { %2804 = vmatpush3.bf16.msra.mxu0 %v2803_v61 }
 0x301   :  { %2805 = vmatprep.subr.bf16.mxu0 %v3024_v0 }
 0x304   :  { %2807 = vmatpush3.bf16.msra.mxu0 %v2806_v29 }
 0x305   :  { %2808 = vmatprep.subr.bf16.mxu0 %v3024_v0 }
 0x308   :  { %2810 = vmatpush3.bf16.msra.mxu0 %v2809_v25 }
 0x309   :  { %2811 = vmatprep.subr.bf16.mxu0 %v3024_v0 }
 0x30b   :  { %2470 = vmatmul.mubr.f32.vlgmr.msra.gmra.mrb[2].mxu0 %v1323_v30 }
 0x30c   :  { %2813 = vmatpush3.bf16.msra.mxu0 %v3324_v63  ;;  %2504 = vmatprep.mubr.msk.f32.mxu0 %vm3025_vm0, %v3026_v1 }
 0x30d   :  { %2814 = vmatprep.subr.bf16.mxu0 %v3024_v0 }
 0x310   :  { %2816 = vmatpush3.bf16.msra.mxu0 %v3332_v49 }
 0x311   :  { %2817 = vmatprep.subr.bf16.mxu0 %v3024_v0 }
 0x314   :  { %2819 = vmatpush3.bf16.msra.mxu0 %v3358_v4 }
 0x315   :  { %2820 = vmatprep.subr.bf16.mxu0 %v3024_v0 }
 0x318   :  { %2822 = vmatpush3.bf16.msra.mxu0 %v3366_v59 }
 0x319   :  { %2823 = vmatprep.subr.bf16.mxu0 %v3024_v0 }
 0x31c   :  { %2825 = vmatpush3.bf16.msra.mxu0 %v3374_v9 }
 0x31d   :  { %2826 = vmatprep.subr.bf16.mxu0 %v3024_v0 }
 0x320   :  { %2828 = vmatpush3.bf16.msra.mxu0 %v3474_v14 }
 0x321   :  { %2829 = vmatprep.subr.bf16.mxu0 %v3024_v0 }
 0x324   :  { %2831 = vmatpush3.bf16.msra.mxu0 %v3478_v5 }
 0x325   :  { %2832 = vmatprep.subr.bf16.mxu0 %v3024_v0 }
 0x328   :  { %2834 = vmatpush3.bf16.msra.mxu0 %v3484_v47 }
 0x329   :  { %2835 = vmatprep.subr.bf16.mxu0 %v3024_v0 }
 0x32b   :  { %2505 = vmatmul.mubr.f32.vlgmr.msra.gmra.mrb[2].mxu0 %v1324_v39 }
 0x32c   :  { %2837 = vmatpush3.bf16.msra.mxu0 %v2836_v21  ;;  %2539 = vmatprep.mubr.msk.f32.mxu0 %vm3025_vm0, %v3026_v1 }
 0x32d   :  { %2838 = vmatprep.subr.bf16.mxu0 %v3024_v0 }
 0x330   :  { %2840 = vmatpush3.bf16.msra.mxu0 %v2839_v36 }
 0x331   :  { %2841 = vmatprep.subr.bf16.mxu0 %v3024_v0 }
 0x334   :  { %2843 = vmatpush3.bf16.msra.mxu0 %v2842_v3 }
 0x335   :  { %2844 = vmatprep.subr.bf16.mxu0 %v3024_v0 }
 0x338   :  { %2846 = vmatpush3.bf16.msra.mxu0 %v2845_v48 }
 0x339   :  { %2847 = vmatprep.subr.bf16.mxu0 %v3024_v0 }
 0x33c   :  { %2849 = vmatpush3.bf16.msra.mxu0 %v2848_v60 }
 0x33d   :  { %2850 = vmatprep.subr.bf16.mxu0 %v3024_v0 }
 0x340   :  { %2852 = vmatpush3.bf16.msra.mxu0 %v2851_v37 }
 0x341   :  { %2853 = vmatprep.subr.bf16.mxu0 %v3024_v0 }
 0x344   :  { %2855 = vmatpush3.bf16.msra.mxu0 %v2854_v6 }
 0x345   :  { %2856 = vmatprep.subr.bf16.mxu0 %v3024_v0 }
 0x348   :  { %2858 = vmatpush3.bf16.msra.mxu0 %v2857_v46 }
 0x349   :  { %2859 = vmatprep.subr.bf16.mxu0 %v3024_v0 }
 0x34b   :  { %2540 = vmatmul.mubr.f32.vlgmr.msra.gmra.mrb[2].mxu0 %v3583_v57 }
 0x34c   :  { %2861 = vmatpush3.bf16.msra.mxu0 %v3324_v63  ;;  %2574 = vmatprep.mubr.msk.f32.mxu0 %vm3025_vm0, %v3026_v1  ;;  %v1892_v1 = vld [vmem:[%s3699_s6] ss:$0 sm:$0xff] }
 0x34d   :  { %2862 = vmatprep.subr.bf16.mxu0 %v3024_v0 }
 0x350   :  { %2864 = vmatpush3.bf16.msra.mxu0 %v3332_v49 }
 0x351   :  { %2865 = vmatprep.subr.bf16.mxu0 %v3024_v0 }
 0x354   :  { %2867 = vmatpush3.bf16.msra.mxu0 %v3358_v4 }
 0x355   :  { %2868 = vmatprep.subr.bf16.mxu0 %v3024_v0 }
 0x358   :  { %2870 = vmatpush3.bf16.msra.mxu0 %v3366_v59 }
 0x359   :  { %2871 = vmatprep.subr.bf16.mxu0 %v3024_v0 }
 0x35c   :  { %2873 = vmatpush3.bf16.msra.mxu0 %v3374_v9 }
 0x35d   :  { %2874 = vmatprep.subr.bf16.mxu0 %v3024_v0 }
 0x360   :  { %2876 = vmatpush3.bf16.msra.mxu0 %v3474_v14 }
 0x361   :  { %2877 = vmatprep.subr.bf16.mxu0 %v3024_v0 }
 0x364   :  { %2879 = vmatpush3.bf16.msra.mxu0 %v3478_v5 }
 0x365   :  { %2880 = vmatprep.subr.bf16.mxu0 %v3024_v0 }
 0x368   :  { %2882 = vmatpush3.bf16.msra.mxu0 %v3484_v47 }
 0x36b   :  { %2575 = vmatmul.mubr.f32.vlgmr.msra.gmra.mrb[2].mxu0 %v3583_v57 }
 0x43e   :  { %v1878_v49 = vpop.f32.mrb[2].mxu0 }
 0x43f   :  { %v2886_v63 = vadd.f32 %v1892_v1, %v1878_v49  ;;  %v2576_v4 = vpop.f32.mrb[3].mxu0 }
 0x441   :  { %1882 = vst [vmem:[%s3700_s7] sm:$0xff] %v2886_v63 }
 0x442   :  { %1887 = vsyncpa [#allocation3], 1 }
 0x443   :  { %1888 = vsyncpa [#allocation5], 1 }
 0x444   :  { %1889 = vsyncpa [#allocation8], 1 }

</bundles_post_ra>
